<compile_context>
chip_gen: v7x
topology: tpu7x:2x2x1
jax: 0.10.0
libtpu: 0.0.40
codegen_flags: <defaults>
</compile_context>

<pallas_src>
import functools

import jax
import jax.numpy as jnp
from jax.experimental import pallas as pl
from jax.experimental.pallas import tpu as pltpu

# ----- hyperparameters (FBCNet_mod defaults where sensible) --------------------------
N_CHAN = 8                      # EEG channels
N_TIME = 128                    # time samples (divisible by strideFactor)
N_CLASS = 2
N_BANDS = 9
M = 32                          # m filters per band
STRIDE = 4                      # strideFactor
SEG = N_TIME // STRIDE          # segment length for the LogVar layer (32)
N_FILT = M * N_BANDS            # conv output channels = 288
FEAT = N_FILT * STRIDE          # flattened feature size = 1152
K_RAW = N_BANDS * N_CHAN        # 72 real input columns (band-major, chan-minor)
K_IN = 80                       # 72 + 1 bias column, zero-padded to a multiple of 8
BT_MAX = 64                     # batch-tile cap (VMEM-safe on v5e/v6e/v7x)


def fbcnet_kernel(x_ref, wbd_ref, wseg_ref, blin_ref, o_ref, acc_ref, *, bt):
    """Grid = (batch_tiles,). One batch tile per step; loop over STRIDE segments inside.

    x_ref    : (STRIDE, bt*SEG, K_IN)     bf16  per-segment time rows; col 72 == 1 (bias)
    wbd_ref  : (K_IN, N_FILT)             bf16  block-diag grouped-conv weight with BN
                                                scale folded; row 72 = folded conv+BN bias
    wseg_ref : (STRIDE, N_CLASS, N_FILT)  f32   last-Linear weight split per segment
    blin_ref : (1, N_CLASS)               f32   last-Linear bias
    o_ref    : (bt, N_CLASS)              f32   log-probabilities
    acc_ref  : (bt, N_CLASS)              f32   logit accumulator (VMEM scratch)
    """
    wbd = wbd_ref[...]                                    # resident 80x288 bf16 weight
    acc_ref[...] = jnp.zeros_like(acc_ref)

    @pl.loop(0, STRIDE)                                   # not unrolled: bounds VMEM liveness
    def _(s):
        xb = x_ref[s]                                     # (bt*SEG, K_IN) bf16
        # Grouped Conv2d((nChan,1), groups=nBands) + BN scale + bias as ONE MXU matmul
        # (bias folded via the constant-1 column -> no post-matmul VALU bias pass).
        y = jnp.dot(xb, wbd, preferred_element_type=jnp.float32)     # (bt*SEG, 288) f32

        # SiLU: y * sigmoid(y) with exp on the EUP and EUP approx reciprocal (no VALU div).
        y = y * pl.reciprocal(1.0 + jnp.exp(-y), approx=True)

        # LogVarLayer for this segment: one-pass unbiased variance over SEG time steps.
        y3 = y.reshape(bt, SEG, N_FILT)                   # rows split per sample
        s1 = jnp.sum(y3, axis=1)                          # (bt, 288)
        s2 = jnp.sum(y3 * y3, axis=1)                     # (bt, 288)
        var = (s2 - s1 * s1 * (1.0 / SEG)) * (1.0 / (SEG - 1))
        lv = jnp.log(jnp.clip(var, 1e-6, 1e6))            # (bt, 288)

        # This segment's contribution to the final Linear.
        acc_ref[...] += jax.lax.dot_general(
            lv, wseg_ref[s], dimension_numbers=(((1,), (1,)), ((), ())),
            preferred_element_type=jnp.float32)           # (bt, nClass)

    logits = acc_ref[...] + blin_ref[...]                 # (bt, nClass)
    mx = jnp.max(logits, axis=-1, keepdims=True)
    z = logits - mx
    lse = jnp.log(jnp.sum(jnp.exp(z), axis=-1, keepdims=True))
    o_ref[...] = (z - lse).astype(o_ref.dtype)            # LogSoftmax


def _pick_bt(b):
    """Batch-tile size: <= BT_MAX, multiple of 8 when tiled, >=2 tiles when B > 8 (v7x)."""
    if b <= 8:
        return b
    half = (b + 1) // 2
    bt = ((half + 7) // 8) * 8
    return min(bt, BT_MAX)


@jax.jit
def fbcnet_forward(x, wbd, wseg, blin):
    """x: (B, nChan, nTime, nBands) float32  ->  (B, nClass) log-probabilities."""
    B = x.shape[0]
    BT = _pick_bt(B)
    nbt = (B + BT - 1) // BT
    Bp = nbt * BT

    xk = x
    if Bp != B:
        xk = jnp.pad(xk, ((0, Bp - B), (0, 0), (0, 0), (0, 0)))

    # Single wrapper layout pass:
    #   (B, nChan, nTime, nBands) -> (STRIDE, B*SEG, K_IN) bf16
    #   row (i*SEG + t') of slab s holds sample i, time s*SEG + t';
    #   column band*nChan + c; column 72 is the constant-1 bias column; 73..79 are zero pad.
    xk = xk.reshape(Bp, N_CHAN, STRIDE, SEG, N_BANDS)
    xk = jnp.transpose(xk, (2, 0, 3, 4, 1))               # (STRIDE, Bp, SEG, nBands, nChan)
    xk = xk.reshape(STRIDE, Bp * SEG, K_RAW)
    ones = jnp.ones((STRIDE, Bp * SEG, 1), xk.dtype)
    zpad = jnp.zeros((STRIDE, Bp * SEG, K_IN - K_RAW - 1), xk.dtype)
    xk = jnp.concatenate([xk, ones, zpad], axis=-1).astype(jnp.bfloat16)

    out = pl.pallas_call(
        functools.partial(fbcnet_kernel, bt=BT),
        out_shape=jax.ShapeDtypeStruct((Bp, N_CLASS), jnp.float32),
        grid_spec=pltpu.PrefetchScalarGridSpec(
            num_scalar_prefetch=0,
            grid=(nbt,),
            in_specs=[
                pl.BlockSpec((STRIDE, BT * SEG, K_IN),  lambda b: (0, b, 0)),
                pl.BlockSpec((K_IN, N_FILT),            lambda b: (0, 0)),
                pl.BlockSpec((STRIDE, N_CLASS, N_FILT), lambda b: (0, 0, 0)),
                pl.BlockSpec((1, N_CLASS),              lambda b: (0, 0)),
            ],
            out_specs=pl.BlockSpec((BT, N_CLASS), lambda b: (b, 0)),
            scratch_shapes=[pltpu.VMEM((BT, N_CLASS), jnp.float32)],
        ),
        compiler_params=pltpu.CompilerParams(
            dimension_semantics=("parallel",),
            vmem_limit_bytes=32 * 1024 * 1024,
        ),
    )(xk, wbd, wseg, blin)
    return out[:B]


def init_params(key):
    """Deterministic synthetic parameters with the shapes implied by FBCNet_mod.__init__."""
    k = jax.random.split(key, 8)
    # Conv2d(nBands, m*nBands, (nChan,1), groups=nBands): weight (m*nBands, 1, nChan, 1)
    conv_w = 0.1 * jax.random.normal(k[0], (N_BANDS, M, N_CHAN), jnp.float32)
    conv_b = 0.1 * jax.random.normal(k[1], (N_BANDS, M), jnp.float32)
    # BatchNorm2d(m*nBands) affine params + running stats (eval mode)
    bn_gamma = 1.0 + 0.1 * jax.random.normal(k[2], (N_BANDS, M), jnp.float32)
    bn_beta = 0.1 * jax.random.normal(k[3], (N_BANDS, M), jnp.float32)
    bn_rmean = 0.1 * jax.random.normal(k[4], (N_BANDS, M), jnp.float32)
    bn_rvar = 1.0 + jnp.abs(jax.random.normal(k[5], (N_BANDS, M), jnp.float32))
    # Linear(m*nBands*strideFactor, nClass): stored as (FEAT, nClass) = torch W^T
    lin_w = 0.05 * jax.random.normal(k[6], (FEAT, N_CLASS), jnp.float32)
    lin_b = 0.05 * jax.random.normal(k[7], (N_CLASS,), jnp.float32)

    # Fold conv bias + eval-mode BatchNorm into per-channel scale/bias:
    #   BN(conv(x)+cb) = s*conv(x) + [s*(cb-rm)+beta],   s = gamma/sqrt(rv+eps)
    bn_scale = bn_gamma / jnp.sqrt(bn_rvar + 1e-5)                 # (nBands, M)
    eff_bias = bn_scale * (conv_b - bn_rmean) + bn_beta            # (nBands, M)

    # Block-diagonal grouped-conv weight with BN scale folded in; bias row at K_RAW:
    #   wbd[band*nChan + c, band*M + j] = conv_w[band, j, c] * bn_scale[band, j]
    scaled_w = conv_w * bn_scale[:, :, None]                       # (nBands, M, nChan)
    wbd = jnp.zeros((K_IN, N_FILT), jnp.float32)
    for band in range(N_BANDS):
        wbd = wbd.at[band * N_CHAN:(band + 1) * N_CHAN,
                     band * M:(band + 1) * M].set(scaled_w[band].T)
    wbd = wbd.at[K_RAW, :].set(eff_bias.reshape(N_FILT))
    wbd = wbd.astype(jnp.bfloat16)

    # Torch feature index f = ch*STRIDE + s  ->  per-segment weight (STRIDE, nClass, 288)
    wseg = jnp.transpose(lin_w.reshape(N_FILT, STRIDE, N_CLASS), (1, 2, 0))
    blin = lin_b.reshape(1, N_CLASS)
    return wbd, wseg, blin


def fbcnet_reference(x, wbd, wseg, blin):
    """Pure-JAX mirror of the torch graph, using the same (bf16-rounded) folded params."""
    B = x.shape[0]
    xt = jnp.transpose(x, (0, 3, 1, 2)).astype(jnp.float32)        # (B, nBands, nChan, nTime)
    x_bf = xt.astype(jnp.bfloat16).astype(jnp.float32)             # match kernel input rounding
    wbd32 = wbd.astype(jnp.float32)
    bias = wbd32[K_RAW]                                            # folded bias row (288,)
    zs = []
    for band in range(N_BANDS):
        wb = wbd32[band * N_CHAN:(band + 1) * N_CHAN, band * M:(band + 1) * M]  # (nChan, M)
        zs.append(jnp.einsum('bct,cm->bmt', x_bf[:, band], wb))    # (B, M, nTime)
    z = jnp.concatenate(zs, axis=1) + bias.reshape(1, N_FILT, 1)
    a = z * jax.nn.sigmoid(z)
    a = a.reshape(B, N_FILT, STRIDE, SEG)
    var = jnp.var(a, axis=3, ddof=1)
    lv = jnp.log(jnp.clip(var, 1e-6, 1e6))                         # (B, N_FILT, STRIDE)
    feat = lv.reshape(B, FEAT)                                     # f = ch*STRIDE + s
    lin_w = jnp.transpose(wseg, (2, 0, 1)).reshape(FEAT, N_CLASS)
    logits = feat @ lin_w + blin
    return jax.nn.log_softmax(logits, axis=-1)


if __name__ == "__main__":
    key = jax.random.PRNGKey(0)
    k_x, k_p = jax.random.split(key)

    batch = 2
    # model input (PyTorch layout): (B, nChan, nTime, nBands)
    x = jax.random.normal(k_x, (batch, N_CHAN, N_TIME, N_BANDS), jnp.float32)

    params = init_params(k_p)
    out = fbcnet_forward(x, *params)
    out = jax.block_until_ready(out)

    assert out.shape == (batch, N_CLASS), out.shape
    assert bool(jnp.all(jnp.isfinite(out)))
    # log-softmax rows must (approximately) exponentiate-sum to 1
    assert bool(jnp.allclose(jnp.sum(jnp.exp(out), axis=-1), 1.0, atol=1e-5))
    # match the pure-JAX reference of the torch graph
    ref = fbcnet_reference(x, *params)
    assert bool(jnp.allclose(out, ref, atol=1e-2, rtol=1e-2)), (out, ref)
    print("KERNEL_OK")
</pallas_src>

<mosaic_0001>
module attributes {stable_mosaic.version = 11 : i64} {
  func.func @fbcnet_kernel(%arg0: i32, %arg1: memref<4x64x80xbf16, #tpu.memory_space<vmem>>, %arg2: memref<80x288xbf16, #tpu.memory_space<vmem>>, %arg3: memref<4x2x288xf32, #tpu.memory_space<vmem>>, %arg4: memref<1x2xf32, #tpu.memory_space<vmem>>, %arg5: memref<2x2xf32, #tpu.memory_space<vmem>>, %arg6: memref<2x2xf32, #tpu.memory_space<vmem>>) attributes {dimension_semantics = [#tpu.dimension_semantics<parallel>], iteration_bounds = array<i64: 1>, scalar_prefetch = 0 : i64, scratch_operands = 1 : i64, tpu.core_type = #tpu.core_type<tc>, window_params = [{transform_indices = @transform_0, window_bounds = array<i64: 4, 64, 80>}, {pipeline_mode = #tpu.pipeline_mode<synchronous>, transform_indices = @transform_1, window_bounds = array<i64: 80, 288>}, {pipeline_mode = #tpu.pipeline_mode<synchronous>, transform_indices = @transform_2, window_bounds = array<i64: 4, 2, 288>}, {pipeline_mode = #tpu.pipeline_mode<synchronous>, transform_indices = @transform_3, window_bounds = array<i64: 1, 2>}, {transform_indices = @transform_4, window_bounds = array<i64: 2, 2>}]} {
    %c0 = arith.constant 0 : index
    %c0_0 = arith.constant 0 : index
    %0 = vector.load %arg2[%c0, %c0_0] : memref<80x288xbf16, #tpu.memory_space<vmem>>, vector<80x288xbf16>
    %cst = arith.constant 0.000000e+00 : f32
    %1 = vector.broadcast %cst : f32 to vector<2x2xf32>
    %c0_1 = arith.constant 0 : index
    %c0_2 = arith.constant 0 : index
    %2 = vector.load %arg6[%c0_1, %c0_2] : memref<2x2xf32, #tpu.memory_space<vmem>>, vector<2x2xf32>
    tpu.vector_store %arg6[%c0_1, %c0_2], %1 {strides = array<i32>} : memref<2x2xf32, #tpu.memory_space<vmem>>, vector<2x2xf32>,
    %c0_i32 = arith.constant 0 : i32
    %c4_i32 = arith.constant 4 : i32
    %3 = arith.addi %c0_i32, %c4_i32 : i32
    %c1_i32 = arith.constant 1 : i32
    scf.for %arg7 = %c0_i32 to %3 step %c1_i32  : i32 {
      %c1_i32_12 = arith.constant 1 : i32
      %19 = arith.muli %arg7, %c1_i32_12 : i32
      %c0_i32_13 = arith.constant 0 : i32
      %20 = arith.addi %c0_i32_13, %19 : i32
      %21 = arith.index_cast %20 : i32 to index
      %c0_14 = arith.constant 0 : index
      %c0_15 = arith.constant 0 : index
      %22 = vector.load %arg1[%21, %c0_14, %c0_15] : memref<4x64x80xbf16, #tpu.memory_space<vmem>>, vector<1x64x80xbf16>
      %23 = vector.shape_cast %22 : vector<1x64x80xbf16> to vector<64x80xbf16>
      %cst_16 = arith.constant dense<0.000000e+00> : vector<64x288xf32>
      %24 = tpu.matmul %23, %0, %cst_16 {dimension_numbers = #tpu.dot_dimension_numbers<[1], [0], [0], [1], [0, 0, 1, 1], [], []>} : vector<64x80xbf16>, vector<80x288xbf16>, vector<64x288xf32> -> vector<64x288xf32>
      %cst_17 = arith.constant 0.000000e+00 : f32
      %25 = vector.broadcast %cst_17 : f32 to vector<64x288xf32>
      %26 = arith.subf %25, %24 : vector<64x288xf32>
      %27 = math.exp %26 : vector<64x288xf32>
      %cst_18 = arith.constant 1.000000e+00 : f32
      %28 = vector.broadcast %cst_18 : f32 to vector<64x288xf32>
      %29 = arith.addf %28, %27 : vector<64x288xf32>
      %30 = tpu.reciprocal %29 {approx = true} : vector<64x288xf32> -> vector<64x288xf32>
      %31 = arith.mulf %24, %30 : vector<64x288xf32>
      %32 = vector.shape_cast %31 : vector<64x288xf32> to vector<2x32x288xf32>
      %cst_19 = arith.constant dense<0.000000e+00> : vector<2x288xf32>
      %33 = vector.multi_reduction <add>, %32, %cst_19 [1] : vector<2x32x288xf32> to vector<2x288xf32>
      %34 = arith.mulf %32, %32 : vector<2x32x288xf32>
      %cst_20 = arith.constant dense<0.000000e+00> : vector<2x288xf32>
      %35 = vector.multi_reduction <add>, %34, %cst_20 [1] : vector<2x32x288xf32> to vector<2x288xf32>
      %36 = arith.mulf %33, %33 : vector<2x288xf32>
      %cst_21 = arith.constant 3.125000e-02 : f32
      %37 = vector.broadcast %cst_21 : f32 to vector<2x288xf32>
      %38 = arith.mulf %36, %37 : vector<2x288xf32>
      %39 = arith.subf %35, %38 : vector<2x288xf32>
      %cst_22 = arith.constant 0.0322580636 : f32
      %40 = vector.broadcast %cst_22 : f32 to vector<2x288xf32>
      %41 = arith.mulf %39, %40 : vector<2x288xf32>
      %cst_23 = arith.constant 9.99999997E-7 : f32
      %cst_24 = arith.constant 1.000000e+06 : f32
      %42 = vector.broadcast %cst_23 : f32 to vector<2x288xf32>
      %43 = arith.maximumf %42, %41 : vector<2x288xf32>
      %44 = vector.broadcast %cst_24 : f32 to vector<2x288xf32>
      %45 = arith.minimumf %44, %43 : vector<2x288xf32>
      %46 = math.log %45 : vector<2x288xf32>
      %c0_25 = arith.constant 0 : index
      %c0_26 = arith.constant 0 : index
      %47 = vector.load %arg6[%c0_25, %c0_26] : memref<2x2xf32, #tpu.memory_space<vmem>>, vector<2x2xf32>
      %48 = arith.index_cast %20 : i32 to index
      %c0_27 = arith.constant 0 : index
      %c0_28 = arith.constant 0 : index
      %49 = vector.load %arg3[%48, %c0_27, %c0_28] : memref<4x2x288xf32, #tpu.memory_space<vmem>>, vector<1x2x288xf32>
      %50 = vector.shape_cast %49 : vector<1x2x288xf32> to vector<2x288xf32>
      %cst_29 = arith.constant dense<0.000000e+00> : vector<2x2xf32>
      %51 = tpu.matmul %46, %50, %cst_29 {dimension_numbers = #tpu.dot_dimension_numbers<[1], [1], [0], [0], [0, 0, 1, 0], [], []>} : vector<2x288xf32>, vector<2x288xf32>, vector<2x2xf32> -> vector<2x2xf32>
      %52 = arith.addf %47, %51 : vector<2x2xf32>
      %c0_30 = arith.constant 0 : index
      %c0_31 = arith.constant 0 : index
      %53 = vector.load %arg6[%c0_30, %c0_31] : memref<2x2xf32, #tpu.memory_space<vmem>>, vector<2x2xf32>
      tpu.vector_store %arg6[%c0_30, %c0_31], %52 {strides = array<i32>} : memref<2x2xf32, #tpu.memory_space<vmem>>, vector<2x2xf32>,
    }
    %c4_i32_3 = arith.constant 4 : i32
    %c0_4 = arith.constant 0 : index
    %c0_5 = arith.constant 0 : index
    %4 = vector.load %arg6[%c0_4, %c0_5] : memref<2x2xf32, #tpu.memory_space<vmem>>, vector<2x2xf32>
    %c0_6 = arith.constant 0 : index
    %c0_7 = arith.constant 0 : index
    %5 = vector.load %arg4[%c0_6, %c0_7] : memref<1x2xf32, #tpu.memory_space<vmem>>, vector<1x2xf32>
    %6 = vector.broadcast %5 : vector<1x2xf32> to vector<2x2xf32>
    %7 = arith.addf %4, %6 : vector<2x2xf32>
    %cst_8 = arith.constant dense<0xFF800000> : vector<2xf32>
    %8 = vector.multi_reduction <maximumf>, %7, %cst_8 [1] : vector<2x2xf32> to vector<2xf32>
    %9 = vector.shape_cast %8 : vector<2xf32> to vector<2x1xf32>
    %10 = vector.broadcast %9 : vector<2x1xf32> to vector<2x2xf32>
    %11 = arith.subf %7, %10 : vector<2x2xf32>
    %12 = math.exp %11 : vector<2x2xf32>
    %cst_9 = arith.constant dense<0.000000e+00> : vector<2xf32>
    %13 = vector.multi_reduction <add>, %12, %cst_9 [1] : vector<2x2xf32> to vector<2xf32>
    %14 = vector.shape_cast %13 : vector<2xf32> to vector<2x1xf32>
    %15 = math.log %14 : vector<2x1xf32>
    %16 = vector.broadcast %15 : vector<2x1xf32> to vector<2x2xf32>
    %17 = arith.subf %11, %16 : vector<2x2xf32>
    %c0_10 = arith.constant 0 : index
    %c0_11 = arith.constant 0 : index
    %18 = vector.load %arg5[%c0_10, %c0_11] : memref<2x2xf32, #tpu.memory_space<vmem>>, vector<2x2xf32>
    tpu.vector_store %arg5[%c0_10, %c0_11], %17 {strides = array<i32>} : memref<2x2xf32, #tpu.memory_space<vmem>>, vector<2x2xf32>,
    return
  }
  func.func @transform_0(%arg0: i32) -> (i32, i32, i32) {
    %c0_i32 = arith.constant 0 : i32
    %c0_i32_0 = arith.constant 0 : i32
    %c0_i32_1 = arith.constant 0 : i32
    return %c0_i32, %arg0, %c0_i32_0 : i32, i32, i32
  }
  func.func @transform_1(%arg0: i32) -> (i32, i32) {
    %c0_i32 = arith.constant 0 : i32
    %c0_i32_0 = arith.constant 0 : i32
    %c0_i32_1 = arith.constant 0 : i32
    return %c0_i32, %c0_i32_0 : i32, i32
  }
  func.func @transform_2(%arg0: i32) -> (i32, i32, i32) {
    %c0_i32 = arith.constant 0 : i32
    %c0_i32_0 = arith.constant 0 : i32
    %c0_i32_1 = arith.constant 0 : i32
    %c0_i32_2 = arith.constant 0 : i32
    return %c0_i32, %c0_i32_0, %c0_i32_1 : i32, i32, i32
  }
  func.func @transform_3(%arg0: i32) -> (i32, i32) {
    %c0_i32 = arith.constant 0 : i32
    %c0_i32_0 = arith.constant 0 : i32
    %c0_i32_1 = arith.constant 0 : i32
    return %c0_i32, %c0_i32_0 : i32, i32
  }
  func.func @transform_4(%arg0: i32) -> (i32, i32) {
    %c0_i32 = arith.constant 0 : i32
    %c0_i32_0 = arith.constant 0 : i32
    return %arg0, %c0_i32 : i32, i32
  }
}

</mosaic_0001>

<bundles_post_ra>
// kernel: fbcnet_forward.1
= control target key start
LH: loop header
LB: loop body
LE: loop exit
PB: predicated region body
PF: predicated region fallthrough
CT: control target
= control target key end

     0   :  { %9 = vsyncpa [#allocation4], 0  ;;  %vm39_vm0 = vcmask 9216   ;;  %v1109_v8 = vmov 0.0   ;;  %s1241_s29 = smov 0   ;;  %s1476_s0 = inlined_call_operand.vmem [shape: bf16[4,64,80], index: 0, kind: input, shape index: {}]   ;;  %s1477_s1 = inlined_call_operand.vmem [shape: bf16[80,288], index: 1, kind: input, shape index: {}]   ;;  %s1478_s2 = inlined_call_operand.vmem [shape: f32[4,2,288], index: 2, kind: input, shape index: {}]   ;;  %s1479_s3 = inlined_call_operand.vmem [shape: f32[1,2], index: 3, kind: input, shape index: {}]   ;;  %s1480_s4 = inlined_call_operand.hbm [shape: f32[2,2], index: 4, kind: output, shape index: {}]  }
   0x1   :  { %v1143_v0 = vld [vmem:[%s1477_s1] sm:$0xff]  ;;  %v1148_v1 = vld [vmem:[%s1477_s1 + $0x8] sm:$0xf]  ;;  %v1153_v2 = vld [vmem:[%s1477_s1 + $0xc] sm:$0xff]  ;;  %40 = vst.msk [vmem:[#allocation2] sm:$0x3] %vm39_vm0, %v1109_v8 }
   0x2   :  { %1486 = vst [vmem:[#allocation6_spill] sm:$0xff] %v1143_v0  ;;  %1487 = vst [vmem:[#allocation7_spill] sm:$0xff] %v1148_v1  ;;  %v1158_v3 = vld [vmem:[%s1477_s1 + $0x14] sm:$0xf]  ;;  %v1163_v4 = vld [vmem:[%s1477_s1 + $0x18] sm:$0xff] }
   0x3   :  { %1488 = vst [vmem:[#allocation8_spill] sm:$0xff] %v1153_v2  ;;  %1489 = vst [vmem:[#allocation9_spill] sm:$0xff] %v1158_v3  ;;  %v1168_v5 = vld [vmem:[%s1477_s1 + $0x20] sm:$0xf]  ;;  %v1173_v6 = vld [vmem:[%s1477_s1 + $0x24] sm:$0xff] }
   0x4   :  { %1490 = vst [vmem:[#allocation10_spill] sm:$0xff] %v1163_v4  ;;  %1491 = vst [vmem:[#allocation11_spill] sm:$0xff] %v1168_v5  ;;  %v1178_v7 = vld [vmem:[%s1477_s1 + $0x2c] sm:$0xf]  ;;  %v1184_v9 = vld [vmem:[%s1477_s1 + $0x30] sm:$0xff] }
   0x5   :  { %1492 = vst [vmem:[#allocation12_spill] sm:$0xff] %v1173_v6  ;;  %1493 = vst [vmem:[#allocation13_spill] sm:$0xff] %v1178_v7  ;;  %v1189_v10 = vld [vmem:[%s1477_s1 + $0x38] sm:$0xf]  ;;  %v1194_v11 = vld [vmem:[%s1477_s1 + $0x3c] sm:$0xff] }
   0x6   :  { %v1199_v12 = vld [vmem:[%s1477_s1 + $0x44] sm:$0xf]  ;;  %v1204_v13 = vld [vmem:[%s1477_s1 + $0x48] sm:$0xff]  ;;  %v1209_v14 = vld [vmem:[%s1477_s1 + $0x50] sm:$0xf] }
   0x7   :  { %v1214_v15 = vld [vmem:[%s1477_s1 + $0x54] sm:$0xff]  ;;  %v1219_v16 = vld [vmem:[%s1477_s1 + $0x5c] sm:$0xf]  ;;  %v1224_v17 = vld [vmem:[%s1477_s1 + $0x60] sm:$0xff] }
   0x8   :  { %v1229_v18 = vld [vmem:[%s1477_s1 + $0x68] sm:$0xf]  ;;  %v1234_v19 = vld [vmem:[%s1477_s1 + $0x6c] sm:$0xff]  ;;  %v1239_v20 = vld [vmem:[%s1477_s1 + $0x74] sm:$0xf] }
   0x9 LB: > { %v1497_v0 = vld [vmem:[#allocation6_spill] sm:$0xff]  ;;  %v1499_v1 = vld [vmem:[#allocation7_spill] sm:$0xff]  ;;  %s910_s1 = sshll.u32 %s1107_s29, 5  ;;  %vm158_vm1 = vcmask 654336   ;;  %v890_v27 = vcombine.high %v1184_v9, %v1194_v11  ;;  %v891_v28 = vcombine.low %v1189_v10, %v1199_v12  ;;  %v1110_v30 = vmov 0   ;;  %s911_s7 = smul.u32 6, %s1107_s29  ;;  %s1107_s29 = sphi %s1241_s29, %s46_s29  }
   0xa   : > { %v1496_v2 = vld [vmem:[#allocation8_spill] sm:$0xff]  ;;  %v1498_v3 = vld [vmem:[#allocation9_spill] sm:$0xff]  ;;  %s1262_s6 = scalar_lea.vmem %s1476_s0, %s910_s1  ;;  %203 = vmatprep.mubr.bf16.mxu0 %v1110_v30  ;;  %v889_v31 = vcombine.low %v1184_v9, %v1194_v11  ;;  %v893_v32 = vcombine.high %v1204_v13, %v1214_v15  ;;  %v894_v33 = vcombine.low %v1209_v14, %v1219_v16  ;;  %v892_v34 = vcombine.low %v1204_v13, %v1214_v15  ;;  %s46_s29 = sadd.s32 1, %s1107_s29  }
   0xb   : > { %v1495_v4 = vld [vmem:[#allocation10_spill] sm:$0xff]  ;;  %v884_v21 = vcombine.high %v1497_v0, %v1496_v2  ;;  %v885_v22 = vcombine.low %v1499_v1, %v1498_v3  ;;  %v883_v23 = vcombine.low %v1497_v0, %v1496_v2  ;;  %v1501_v5 = vld [vmem:[#allocation11_spill] sm:$0xff]  ;;  %v896_v35 = vcombine.high %v1224_v17, %v1234_v19  ;;  %v963_v40 = vld [vmem:[%s1262_s6 + $0x18] sm:$0xff]   ;;  %s653_s10 = scalar_lea.vmem %s1478_s2, %s911_s7  ;;  %p43_p0 = scmp.ge.s32.totalorder %s46_s29, 4  }
   0xc   : > { %v1494_v6 = vld [vmem:[#allocation12_spill] sm:$0xff]  ;;  %v1500_v7 = vld [vmem:[#allocation13_spill] sm:$0xff]  ;;  %v897_v36 = vcombine.low %v1229_v18, %v1239_v20  ;;  %v895_v37 = vcombine.low %v1224_v17, %v1234_v19  ;;  %v961_v38 = vld [vmem:[%s1262_s6 + $0x8] sm:$0xff]   ;;  %v672_v41 = vlaneseq  ;;  %v1111_v42 = vmov 1983009808   ;;  %s1114_s0 = smov (%p43_p0), [#allocation3]  }
   0xd   : > { %v887_v24 = vcombine.high %v1495_v4, %v1494_v6  ;;  %v888_v25 = vcombine.low %v1501_v5, %v1500_v7  ;;  %171 = vmatprep.subr.bf16.mxu0 %v884_v21  ;;  %923 = vmatprep.subr.bf16.mxu1 %v885_v22  ;;  %v886_v26 = vcombine.low %v1495_v4, %v1494_v6  ;;  %v960_v29 = vld [vmem:[%s1262_s6] sm:$0xff]   ;;  %v962_v39 = vld [vmem:[%s1262_s6 + $0x10] sm:$0xff]   ;;  %v670_v43 = vunpack.c.l.s4 %v1111_v42  ;;  %s860_s2 = sshll.u32 (%p43_p0), %s1114_s0, 4  ;;  %s861_s2 = int_to_ptr.vmem [resolvable:$true] %s860_s2 }
   0xe   : > { %172 = vmatpush1.bf16.msra.mxu0 %v883_v23  ;;  %924 = vmatpush3.bf16.msra.mxu1 %v885_v22  ;;  %v673_v44 = vshrl.u32 %v672_v41, 7  ;;  %v654_v45 = vld [vmem:[%s653_s10] sm:$0x3f]  ;;  %v1481_v52 = vmov 0.0   ;;  %vm471_vm2 = vcmask 261120   ;;  %vm661_vm3 = vcmask 1041409   ;;  %p1082_p2 = scmp.lt.s32.totalorder (%p43_p0), %s861_s2, %s861_s2 }
   0xf   : > { %173 = vmatprep.subr.bf16.mxu0 %v887_v24  ;;  %925 = vmatprep.subr.bf16.mxu1 %v888_v25  ;;  %v671_v46 = vunpack.c.0.s8 %v670_v43  ;;  %v668_v47 = vcombine.high %v654_v45, %v654_v45  ;;  %vm1113_vm4 = vmmov 0  }
  0x10   : > { %933 = vmatprep.mubr.msk.bf16.mxu1 %vm158_vm1, %v960_v29 }
  0x11   : > { %v674_v48 = vsub.s32 %v671_v46, %v673_v44 }
  0x12   : > { %174 = vmatpush1.bf16.msra.mxu0 %v886_v26  ;;  %926 = vmatpush3.bf16.msra.mxu1 %v888_v25 }
  0x13   : > { %175 = vmatprep.subr.bf16.mxu0 %v890_v27  ;;  %927 = vmatprep.subr.bf16.mxu1 %v891_v28  ;;  %v675_v49 = vrot.slane %v654_v45, %v674_v48  ;;  %v1298_v50 = vrot.slane %v668_v47, %v674_v48 }
  0x15   : > { %v683_v51 = vcombine.high %v675_v49, %v675_v49 }
  0x16   : > { %176 = vmatpush1.bf16.msra.mxu0 %v889_v31  ;;  %928 = vmatpush3.bf16.msra.mxu1 %v891_v28 }
  0x17   : > { %177 = vmatprep.subr.bf16.mxu0 %v893_v32  ;;  %929 = vmatprep.subr.bf16.mxu1 %v894_v33 }
  0x1a   : > { %178 = vmatpush1.bf16.msra.mxu0 %v892_v34  ;;  %930 = vmatpush3.bf16.msra.mxu1 %v894_v33 }
  0x1b   : > { %179 = vmatprep.subr.bf16.mxu0 %v896_v35  ;;  %931 = vmatprep.subr.bf16.mxu1 %v897_v36 }
  0x1e   : > { %180 = vmatpush1.bf16.msra.mxu0 %v895_v37  ;;  %932 = vmatpush3.bf16.msra.mxu1 %v897_v36 }
  0x1f   : > { %690 = vmatprep.subr.mxu1 %v683_v51 }
  0x21   : > { %898 = vmatmul.mubr.msk.bf16.vlgmr.msra.gmra.mrb[0].mxu0 %vm158_vm1, %v960_v29  ;;  %934 = vmatmul.mubr.msk.bf16.vlgmr.msra.gmra.mrb[0].mxu1 %vm158_vm1, %v961_v38 }
  0x22   : > { %213 = vmatprep.mubr.bf16.mxu0 %v1110_v30  ;;  %937 = vmatprep.mubr.msk.bf16.mxu1 %vm158_vm1, %v962_v39 }
  0x27   : > { %691 = vmatpush1.xpose.msra.mxu1 %v675_v49 }
  0x28   : > { %941 = vmatprep.subr.mxu1 %v1481_v52 }
  0x29   : > { %899 = vmatmul.mubr.msk.bf16.gmra.mrb[4].mxu0 %vm158_vm1, %v961_v38  ;;  %938 = vmatmul.mubr.msk.bf16.gmra.mrb[4].mxu1 %vm158_vm1, %v963_v40 }
  0x2a   : > { %223 = vmatprep.mubr.bf16.mxu0 %v1110_v30 }
  0x31   : > { %900 = vmatmul.mubr.msk.bf16.gmra.mrb[8].mxu0 %vm158_vm1, %v962_v39 }
  0x32   : > { %233 = vmatprep.mubr.bf16.mxu0 %v1110_v30 }
  0x39   : > { %901 = vmatmul.mubr.msk.bf16.gmra.mrb[12].mxu0 %vm158_vm1, %v963_v40 }
  0xf4   : > { %v1301_v53 = vpop.f32.mrb[0].mxu0  ;;  %v1303_v54 = vpop.f32.mrb[0].mxu1 }
  0xf5   : > { %v309_v55 = vsub.f32 0.0, %v1301_v53  ;;  %v317_v56 = vsub.f32 0.0, %v1303_v54  ;;  %v1307_v57 = vpop.f32.mrb[1].mxu0  ;;  %v1309_v58 = vpop.f32.mrb[1].mxu1 }
  0xf6   : > { %v310_v59 = vsub.f32 0.0, %v1307_v57  ;;  %v311_v60 = vsub.f32 0.0, %v1309_v58  ;;  %v1313_v61 = vpop.f32.mrb[2].mxu0  ;;  %v1315_v62 = vpop.f32.mrb[2].mxu1 }
  0xf7   : > { %v333_v63 = vmul.f32 1.442695, %v309_v55  ;;  %v349_v8 = vmul.f32 1.442695, %v317_v56  ;;  %v312_v21 = vsub.f32 0.0, %v1313_v61  ;;  %v320_v22 = vsub.f32 0.0, %v1315_v62 }
  0xf8   : > { %v335_v23 = vmul.f32 1.442695, %v310_v59  ;;  %v337_v24 = vmul.f32 1.442695, %v311_v60  ;;  %v1319_v25 = vpop.f32.mrb[3].mxu0  ;;  %v1321_v26 = vpop.f32.mrb[3].mxu1 }
  0xf9   : > { %965 = vpow2.f32 %v333_v63  ;;  %v339_v27 = vmul.f32 1.442695, %v312_v21  ;;  %v313_v28 = vsub.f32 0.0, %v1319_v25  ;;  %v355_v29 = vmul.f32 1.442695, %v320_v22 }
  0xfa   : > { %967 = vpow2.f32 %v349_v8  ;;  %v314_v30 = vsub.f32 0.0, %v1321_v26 }
  0xfb   : > { %969 = vpow2.f32 %v335_v23  ;;  %v341_v31 = vmul.f32 1.442695, %v313_v28 }
  0xfc   : > { %971 = vpow2.f32 %v337_v24  ;;  %v343_v32 = vmul.f32 1.442695, %v314_v30  ;;  %v1325_v33 = vpop.f32.mrb[4].mxu0  ;;  %v1327_v34 = vpop.f32.mrb[4].mxu1 }
  0xfd   : > { %973 = vpow2.f32 %v339_v27  ;;  %v315_v35 = vsub.f32 0.0, %v1325_v33  ;;  %v329_v36 = vsub.f32 0.0, %v1327_v34  ;;  %v1331_v37 = vpop.f32.mrb[5].mxu0  ;;  %v1333_v38 = vpop.f32.mrb[5].mxu1 }
  0xfe   : > { %975 = vpow2.f32 %v355_v29  ;;  %v316_v39 = vsub.f32 0.0, %v1331_v37  ;;  %v323_v40 = vsub.f32 0.0, %v1333_v38  ;;  %v1337_v41 = vpop.f32.mrb[6].mxu0  ;;  %v1339_v42 = vpop.f32.mrb[6].mxu1 }
  0xff   : > { %977 = vpow2.f32 %v341_v31  ;;  %v345_v43 = vmul.f32 1.442695, %v315_v35  ;;  %v373_v44 = vmul.f32 1.442695, %v329_v36  ;;  %v318_v45 = vsub.f32 0.0, %v1337_v41  ;;  %v1342_v46 = vpop.f32.mrb[7].mxu0 }
 0x100   : > { %979 = vpow2.f32 %v343_v32  ;;  %v347_v47 = vmul.f32 1.442695, %v316_v39  ;;  %v361_v48 = vmul.f32 1.442695, %v323_v40  ;;  %v1344_v49 = vpop.f32.mrb[7].mxu1 }
 0x101   : > { %981 = vpow2.f32 %v345_v43  ;;  %v351_v51 = vmul.f32 1.442695, %v318_v45 }
 0x102   : > { %983 = vpow2.f32 %v373_v44  ;;  %v332_v44 = vsub.f32 0.0, %v1339_v42 }
 0x103   : > { %v966_v55 = vpop.eup %965  ;;  %985 = vpow2.f32 %v347_v47 }
 0x104   : > { %v968_v56 = vpop.eup %967  ;;  %v381_v59 = vadd.f32 1.0, %v966_v55  ;;  %987 = vpow2.f32 %v361_v48  ;;  %v1346_v60 = vpop.f32.mrb[8].mxu0  ;;  %v319_v48 = vsub.f32 0.0, %v1342_v46 }
 0x105   : > { %v970_v63 = vpop.eup %969  ;;  %v389_v8 = vadd.f32 1.0, %v968_v56  ;;  %989 = vpow2.f32 %v351_v51  ;;  %v1348_v21 = vpop.f32.mrb[9].mxu0 }
 0x106   : > { %v972_v22 = vpop.eup %971  ;;  %991 = vrcp.f32 %v381_v59  ;;  %v382_v23 = vadd.f32 1.0, %v970_v63  ;;  %v1350_v24 = vpop.f32.mrb[10].mxu0  ;;  %v326_v59 = vsub.f32 0.0, %v1344_v49 }
 0x107   : > { %v974_v27 = vpop.eup %973  ;;  %993 = vrcp.f32 %v389_v8  ;;  %v383_v28 = vadd.f32 1.0, %v972_v22  ;;  %v1352_v29 = vpop.f32.mrb[11].mxu0 }
 0x108   : > { %v976_v30 = vpop.eup %975  ;;  %995 = vrcp.f32 %v382_v23  ;;  %v384_v31 = vadd.f32 1.0, %v974_v27 }
 0x109   : > { %v978_v32 = vpop.eup %977  ;;  %997 = vrcp.f32 %v383_v28  ;;  %v392_v35 = vadd.f32 1.0, %v976_v30  ;;  %v379_v28 = vmul.f32 1.442695, %v332_v44  ;;  %v321_v30 = vsub.f32 0.0, %v1346_v60 }
 0x10a   : > { %v980_v36 = vpop.eup %979  ;;  %999 = vrcp.f32 %v384_v31  ;;  %v385_v39 = vadd.f32 1.0, %v978_v32 }
 0x10b   : > { %v982_v40 = vpop.eup %981  ;;  %1001 = vrcp.f32 %v392_v35  ;;  %v386_v43 = vadd.f32 1.0, %v980_v36  ;;  %v353_v36 = vmul.f32 1.442695, %v319_v48  ;;  %v357_v48 = vmul.f32 1.442695, %v321_v30 }
 0x10c   : > { %v984_v45 = vpop.eup %983  ;;  %1003 = vrcp.f32 %v385_v39  ;;  %v387_v47 = vadd.f32 1.0, %v982_v40  ;;  %v1356_v51 = vpop.f32.mrb[12].mxu0  ;;  %v322_v39 = vsub.f32 0.0, %v1348_v21 }
 0x10d   : > { %v986_v55 = vpop.eup %985  ;;  %1005 = vrcp.f32 %v386_v43  ;;  %v401_v56 = vadd.f32 1.0, %v984_v45  ;;  %v1359_v63 = vpop.f32.mrb[13].mxu0  ;;  %v367_v43 = vmul.f32 1.442695, %v326_v59  ;;  %v324_v45 = vsub.f32 0.0, %v1350_v24 }
 0x10e   : > { %v988_v8 = vpop.eup %987  ;;  %1007 = vrcp.f32 %v387_v47  ;;  %v388_v22 = vadd.f32 1.0, %v986_v55  ;;  %v1361_v23 = vpop.f32.mrb[14].mxu0  ;;  %v325_v47 = vsub.f32 0.0, %v1352_v29  ;;  %v1373_v59 = vmul.f32 1.442695, %v322_v39 }
 0x10f   : > { %v990_v27 = vpop.eup %989  ;;  %v1364_v31 = vpop.f32.mrb[15].mxu0  ;;  %v395_v52 = vadd.f32 1.0, %v988_v8 }
 0x110   : > { %v992_v32 = vpop.eup %991  ;;  %1009 = vrcp.f32 %v388_v22  ;;  %v390_v35 = vadd.f32 1.0, %v990_v27  ;;  %v1378_v8 = vmul.f32 1.442695, %v325_v47 }
 0x111   : > { %v994_v40 = vpop.eup %993  ;;  %1011 = vrcp.f32 %v401_v56  ;;  %v429_v44 = vmul.f32 %v992_v32, %v1301_v53  ;;  %v1376_v53 = vmul.f32 1.442695, %v324_v45 }
 0x112   : > { %v996_v55 = vpop.eup %995  ;;  %1013 = vrcp.f32 %v390_v35  ;;  %v437_v1 = vmul.f32 %v994_v40, %v1303_v54 }
 0x113   : > { %v998_v0 = vpop.eup %997  ;;  %1015 = vpow2.f32 %v379_v28  ;;  %v430_v27 = vmul.f32 %v996_v55, %v1307_v57  ;;  %v516_v32 = vmul.f32 %v429_v44, %v429_v44  ;;  %v327_v57 = vsub.f32 0.0, %v1356_v51 }
 0x114   : > { %v1000_v22 = vpop.eup %999  ;;  %v431_v56 = vmul.f32 %v998_v0, %v1309_v58  ;;  %1017 = vpow2.f32 %v353_v36  ;;  %v475_v0 = vsel %vm471_vm2, %v437_v1, 0.0  ;;  %v524_v39 = vmul.f32 %v437_v1, %v437_v1 }
 0x115   : > { %v1002_v2 = vpop.eup %1001  ;;  %v432_v3 = vmul.f32 %v1000_v22, %v1313_v61  ;;  %1019 = vpow2.f32 %v367_v43  ;;  %v517_v40 = vmul.f32 %v430_v27, %v430_v27 }
 0x116   : > { %v1004_v54 = vpop.eup %1003  ;;  %v440_v28 = vmul.f32 %v1002_v2, %v1315_v62  ;;  %1021 = vrcp.f32 %v395_v52  ;;  %v518_v43 = vmul.f32 %v431_v56, %v431_v56  ;;  %v472_v62 = vsel %vm471_vm2, %v431_v56, 0.0 }
 0x117   : > { %v1006_v30 = vpop.eup %1005  ;;  %v453_v58 = vadd.f32 %v432_v3, %v429_v44  ;;  %v519_v35 = vmul.f32 %v432_v3, %v432_v3  ;;  %v433_v36 = vmul.f32 %v1004_v54, %v1319_v25  ;;  %1023 = vpow2.f32 %v357_v48 }
 0x118   : > { %v1008_v61 = vpop.eup %1007  ;;  %v434_v45 = vmul.f32 %v1006_v30, %v1321_v26  ;;  %v527_v4 = vmul.f32 %v440_v28, %v440_v28  ;;  %v561_v26 = vsel %vm471_vm2, %v524_v39, 0.0 }
 0x119   : > { %v540_v47 = vadd.f32 %v519_v35, %v516_v32  ;;  %v462_v55 = vadd.f32 %v433_v36, %v430_v27  ;;  %v520_v22 = vmul.f32 %v433_v36, %v433_v36  ;;  %v435_v2 = vmul.f32 %v1008_v61, %v1325_v33 }
 0x11a   : > { %v1010_v52 = vpop.eup %1009  ;;  %v473_v44 = vsel %vm471_vm2, %v434_v45, 0.0  ;;  %v521_v3 = vmul.f32 %v434_v45, %v434_v45  ;;  %v558_v27 = vsel %vm471_vm2, %v518_v43, 0.0  ;;  %v563_v43 = vsel %vm471_vm2, %v527_v4, 0.0 }
 0x11b   : > { %v1012_v5 = vpop.eup %1011  ;;  %v549_v25 = vadd.f32 %v520_v22, %v517_v40  ;;  %v474_v54 = vadd.f32 %v473_v44, %v472_v62  ;;  %v454_v1 = vadd.f32 %v453_v58, %v435_v2  ;;  %v522_v6 = vmul.f32 %v435_v2, %v435_v2 }
 0x11c   : > { %v1014_v7 = vpop.eup %1013  ;;  %v559_v32 = vsel %vm471_vm2, %v521_v3, 0.0  ;;  %v436_v33 = vmul.f32 %v1010_v52, %v1331_v37  ;;  %v477_v40 = vsel %vm471_vm2, %v440_v28, 0.0  ;;  %v328_v37 = vsub.f32 0.0, %v1359_v63 }
 0x11d   : > { %v1016_v30 = vpop.eup %1015  ;;  %v476_v56 = vadd.f32 %v475_v0, %v474_v54  ;;  %v560_v35 = vadd.f32 %v559_v32, %v558_v27  ;;  %v541_v36 = vadd.f32 %v540_v47, %v522_v6  ;;  %v438_v22 = vmul.f32 %v1014_v7, %v1337_v41 }
 0x11e   : > { %v1018_v61 = vpop.eup %1017  ;;  %v1393_v45 = vadd.f32 %v462_v55, %v436_v33  ;;  %v523_v58 = vmul.f32 %v436_v33, %v436_v33  ;;  %v404_v47 = vadd.f32 1.0, %v1016_v30  ;;  %v369_v3 = vmul.f32 1.442695, %v327_v57 }
 0x11f   : > { %v1020_v39 = vpop.eup %1019  ;;  %v478_v2 = vadd.f32 %v477_v40, %v476_v56  ;;  %v562_v62 = vadd.f32 %v561_v26, %v560_v35  ;;  %v455_v6 = vadd.f32 %v454_v1, %v438_v22  ;;  %v525_v48 = vmul.f32 %v438_v22, %v438_v22 }
 0x120   : > { %v1022_v52 = vpop.eup %1021  ;;  %v1398_v0 = vadd.f32 %v549_v25, %v523_v58  ;;  %v391_v55 = vadd.f32 1.0, %v1018_v61  ;;  %1025 = vrcp.f32 %v404_v47  ;;  %v398_v7 = vadd.f32 1.0, %v1020_v39 }
 0x121   : > { %v479_v44 = vrot.slane %v478_v2, 4  ;;  %v564_v28 = vadd.f32 %v563_v43, %v562_v62  ;;  %v456_v54 = vrot.slane %v455_v6, 4  ;;  %v542_v27 = vadd.f32 %v541_v36, %v525_v48  ;;  %v1024_v40 = vpop.eup %1023 }
 0x122   : > { %1027 = vrcp.f32 %v391_v55  ;;  %v330_v26 = vsub.f32 0.0, %v1361_v23  ;;  %v331_v25 = vsub.f32 0.0, %v1364_v31  ;;  %v449_v56 = vmul.f32 %v1012_v5, %v1327_v34 }
 0x123   : > { %v480_v41 = vadd.f32 %v479_v44, %v478_v2  ;;  %v565_v4 = vrot.slane %v564_v28, 4  ;;  %v457_v32 = vadd.f32 %v456_v54, %v455_v6  ;;  %v543_v33 = vrot.slane %v542_v27, 4 }
 0x124   : > { %1029 = vrcp.f32 %v398_v7  ;;  %v371_v35 = vmul.f32 1.442695, %v328_v37  ;;  %v443_v57 = vmul.f32 %v1022_v52, %v1333_v38  ;;  %v375_v39 = vmul.f32 1.442695, %v330_v26 }
 0x125   : > { %v481_v1 = vrot.slane %v480_v41, 2  ;;  %v566_v30 = vadd.f32 %v565_v4, %v564_v28  ;;  %v458_v36 = vrot.slane %v457_v32, 2  ;;  %v544_v61 = vadd.f32 %v543_v33, %v542_v27 }
 0x126   : > { %1031 = vpow2.f32 %v1373_v59  ;;  %v377_v62 = vmul.f32 1.442695, %v331_v25  ;;  %v536_v5 = vmul.f32 %v449_v56, %v449_v56  ;;  %v530_v34 = vmul.f32 %v443_v57, %v443_v57 }
 0x127   : > { %v482_v58 = vadd.f32 %v481_v1, %v480_v41  ;;  %v567_v22 = vrot.slane %v566_v30, 2  ;;  %1033 = vpow2.f32 %v1376_v53  ;;  %v459_v43 = vadd.f32 %v458_v36, %v457_v32 }
 0x128   : > { %v545_v2 = vrot.slane %v544_v61, 2  ;;  %1035 = vpow2.f32 %v1378_v8  ;;  %v393_v48 = vadd.f32 1.0, %v1024_v40  ;;  %v506_v8 = vsel %vm471_vm2, %v449_v56, 0.0 }
 0x129   : > { %v483_v6 = vrot.slane %v482_v58, 1  ;;  %1037 = vpow2.f32 %v369_v3  ;;  %v460_v38 = vrot.slane %v459_v43, 1  ;;  %v1407_v59 = vadd.f32 %v567_v22, %v566_v30 }
 0x12a   : > { %v546_v37 = vadd.f32 %v545_v2, %v544_v61  ;;  %1039 = vpow2.f32 %v371_v35  ;;  %v1026_v47 = vpop.eup %1025  ;;  %v592_v55 = vsel %vm471_vm2, %v536_v5, 0.0  ;;  %v503_v27 = vsel %vm471_vm2, %v443_v57, 0.0 }
 0x12b   : > { %v484_v52 = vadd.f32 %v483_v6, %v482_v58  ;;  %1041 = vpow2.f32 %v375_v39  ;;  %v461_v53 = vadd.f32 %v460_v38, %v459_v43  ;;  %v452_v3 = vmul.f32 %v1026_v47, %v1339_v42 }
 0x12c   : > { %v547_v44 = vrot.slane %v546_v37, 1  ;;  %1043 = vpow2.f32 %v377_v62  ;;  %v1028_v28 = vpop.eup %1027  ;;  %v589_v7 = vsel %vm471_vm2, %v530_v34, 0.0  ;;  %v569_v26 = vrot.slane %v1407_v59, 1 }
 0x12d   : > { %v602_v41 = vmul.f32 %v461_v53, %v461_v53  ;;  %v439_v4 = vmul.f32 %v1028_v28, %v1342_v46  ;;  %v604_v32 = vmul.f32 %v484_v52, %v484_v52  ;;  %1045 = vrcp.f32 %v393_v48 }
 0x12e   : > { %v1030_v54 = vpop.eup %1029  ;;  %v1417_v1 = vadd.f32 %v547_v44, %v546_v37  ;;  %v539_v57 = vmul.f32 %v452_v3, %v452_v3  ;;  %v508_v5 = vsel %vm471_vm2, %v452_v3, 0.0 }
 0x12f   : > { %v446_v33 = vmul.f32 %v1030_v54, %v1344_v49  ;;  %v1419_v30 = vmul.f32 0.03125, %v602_v41  ;;  %v464_v42 = vadd.f32 %v1393_v45, %v439_v4  ;;  %v526_v56 = vmul.f32 %v439_v4, %v439_v4 }
 0x130   : > { %v1032_v25 = vpop.eup %1031  ;;  %v610_v2 = vmul.f32 0.03125, %v604_v32 }
 0x131   : > { %v1034_v35 = vpop.eup %1033  ;;  %v504_v36 = vsel %vm471_vm2, %v446_v33, 0.0  ;;  %v533_v61 = vmul.f32 %v446_v33, %v446_v33  ;;  %v394_v46 = vadd.f32 1.0, %v1032_v25  ;;  %v614_v58 = vsub.f32 %v1417_v1, %v1419_v30 }
 0x132   : > { %v1036_v40 = vpop.eup %1035  ;;  %v465_v49 = vrot.slane %v464_v42, 4  ;;  %v551_v22 = vadd.f32 %v1398_v0, %v526_v56  ;;  %v505_v39 = vadd.f32 %v504_v36, %v503_v27  ;;  %v396_v45 = vadd.f32 1.0, %v1034_v35 }
 0x133   : > { %v1038_v43 = vpop.eup %1037  ;;  %v590_v62 = vsel %vm471_vm2, %v533_v61, 0.0  ;;  %1047 = vrcp.f32 %v394_v46  ;;  %v397_v47 = vadd.f32 1.0, %v1036_v40  ;;  %v594_v0 = vsel %vm471_vm2, %v539_v57, 0.0 }
 0x134   : > { %v1040_v6 = vpop.eup %1039  ;;  %v466_v34 = vadd.f32 %v465_v49, %v464_v42  ;;  %v552_v38 = vrot.slane %v551_v22, 4  ;;  %v507_v37 = vadd.f32 %v506_v8, %v505_v39  ;;  %v591_v48 = vadd.f32 %v590_v62, %v589_v7 }
 0x135   : > { %v1042_v52 = vpop.eup %1041  ;;  %1049 = vrcp.f32 %v396_v45  ;;  %v399_v53 = vadd.f32 1.0, %v1038_v43  ;;  %v400_v4 = vadd.f32 1.0, %v1040_v6  ;;  %v570_v7 = vadd.f32 %v569_v26, %v1407_v59 }
 0x136   : > { %v1044_v44 = vpop.eup %1043  ;;  %v467_v28 = vrot.slane %v466_v34, 2  ;;  %v553_v54 = vadd.f32 %v552_v38, %v551_v22  ;;  %v509_v27 = vadd.f32 %v508_v5, %v507_v37  ;;  %v593_v41 = vadd.f32 %v592_v55, %v591_v48 }
 0x137   : > { %1051 = vrcp.f32 %v397_v47  ;;  %v402_v32 = vadd.f32 1.0, %v1042_v52  ;;  %v1046_v8 = vpop.eup %1045  ;;  %v403_v56 = vadd.f32 1.0, %v1044_v44  ;;  %v616_v55 = vsub.f32 %v570_v7, %v610_v2 }
 0x138   : > { %v468_v33 = vadd.f32 %v467_v28, %v466_v34  ;;  %v554_v3 = vrot.slane %v553_v54, 2  ;;  %v510_v25 = vrot.slane %v509_v27, 4  ;;  %1053 = vrcp.f32 %v399_v53 }
 0x139   : > { %v595_v42 = vadd.f32 %v594_v0, %v593_v41  ;;  %1055 = vrcp.f32 %v400_v4  ;;  %v441_v43 = vmul.f32 %v1046_v8, %v1346_v60  ;;  %v622_v47 = vmul.f32 0.032258064, %v616_v55 }
 0x13a   : > { %v469_v35 = vrot.slane %v468_v33, 1  ;;  %v555_v36 = vadd.f32 %v554_v3, %v553_v54  ;;  %v511_v57 = vadd.f32 %v510_v25, %v509_v27  ;;  %1057 = vrcp.f32 %v402_v32 }
 0x13b   : > { %v596_v61 = vrot.slane %v595_v42, 4  ;;  %1059 = vrcp.f32 %v403_v56  ;;  %v528_v48 = vmul.f32 %v441_v43, %v441_v43 }
 0x13c   : > { %v470_v46 = vadd.f32 %v469_v35, %v468_v33  ;;  %v512_v40 = vrot.slane %v511_v57, 2  ;;  %v556_v22 = vrot.slane %v555_v36, 1  ;;  %v628_v35 = vmax.f32 %v622_v47, 1e-06 }
 0x13d   : > { %v1048_v49 = vpop.eup %1047  ;;  %v597_v39 = vadd.f32 %v596_v61, %v595_v42 }
 0x13e   : > { %v603_v62 = vmul.f32 %v470_v46, %v470_v46  ;;  %v513_v45 = vadd.f32 %v512_v40, %v511_v57  ;;  %v442_v6 = vmul.f32 %v1048_v49, %v1348_v21  ;;  %v1435_v2 = vadd.f32 %v556_v22, %v555_v36 }
 0x13f   : > { %v1050_v59 = vpop.eup %1049  ;;  %v598_v26 = vrot.slane %v597_v39, 2 }
 0x140   : > { %v1432_v5 = vmul.f32 0.03125, %v603_v62  ;;  %v514_v34 = vrot.slane %v513_v45, 1  ;;  %v444_v38 = vmul.f32 %v1050_v59, %v1350_v24  ;;  %v529_v21 = vmul.f32 %v442_v6, %v442_v6 }
 0x141   : > { %v1052_v37 = vpop.eup %1051  ;;  %v599_v52 = vadd.f32 %v598_v26, %v597_v39 }
 0x142   : > { %v1054_v53 = vpop.eup %1053  ;;  %v515_v44 = vadd.f32 %v514_v34, %v513_v45  ;;  %v485_v60 = vadd.f32 %v444_v38, %v441_v43  ;;  %v531_v0 = vmul.f32 %v444_v38, %v444_v38  ;;  %v445_v28 = vmul.f32 %v1052_v37, %v1352_v29 }
 0x143   : > { %v1056_v54 = vpop.eup %1055  ;;  %v600_v27 = vrot.slane %v599_v52, 1  ;;  %v447_v41 = vmul.f32 %v1054_v53, %v1356_v51  ;;  %v615_v24 = vsub.f32 %v1435_v2, %v1432_v5  ;;  %v634_v34 = vmin.f32 %v628_v35, 1000000.0 }
 0x144   : > { %v1058_v4 = vpop.eup %1057  ;;  %v607_v32 = vmul.f32 %v515_v44, %v515_v44  ;;  %v571_v33 = vadd.f32 %v531_v0, %v528_v48  ;;  %v494_v3 = vadd.f32 %v445_v28, %v442_v6  ;;  %v532_v25 = vmul.f32 %v445_v28, %v445_v28 }
 0x145   : > { %v1060_v8 = vpop.eup %1059  ;;  %v486_v7 = vadd.f32 %v485_v60, %v447_v41  ;;  %v534_v42 = vmul.f32 %v447_v41, %v447_v41  ;;  %v448_v56 = vmul.f32 %v1056_v54, %v1359_v63  ;;  %v450_v57 = vmul.f32 %v1058_v4, %v1361_v23 }
 0x146   : > { %v613_v29 = vmul.f32 0.03125, %v607_v32  ;;  %v580_v36 = vadd.f32 %v532_v25, %v529_v21  ;;  %v451_v51 = vmul.f32 %v1060_v8, %v1364_v31  ;;  %v601_v61 = vadd.f32 %v600_v27, %v599_v52 }
 0x147   : > { %v572_v55 = vadd.f32 %v571_v33, %v534_v42  ;;  %v495_v46 = vadd.f32 %v494_v3, %v448_v56  ;;  %v535_v40 = vmul.f32 %v448_v56, %v448_v56  ;;  %v487_v49 = vadd.f32 %v486_v7, %v450_v57 }
 0x148   : > { %v537_v22 = vmul.f32 %v450_v57, %v450_v57  ;;  %v538_v39 = vmul.f32 %v451_v51, %v451_v51  ;;  %v619_v45 = vsub.f32 %v601_v61, %v613_v29  ;;  %1061 = vlog2.f32 %v634_v34 }
 0x149   : > { %v581_v43 = vadd.f32 %v580_v36, %v535_v40  ;;  %v496_v62 = vadd.f32 %v495_v46, %v451_v51  ;;  %v488_v59 = vrot.slane %v487_v49, 4  ;;  %v620_v41 = vmul.f32 0.032258064, %v614_v58 }
 0x14a   : > { %v573_v26 = vadd.f32 %v572_v55, %v537_v22  ;;  %v625_v5 = vmul.f32 0.032258064, %v619_v45  ;;  %v621_v7 = vmul.f32 0.032258064, %v615_v24 }
 0x14b   : > { %v497_v63 = vrot.slane %v496_v62, 4  ;;  %v582_v6 = vadd.f32 %v581_v43, %v538_v39  ;;  %v489_v38 = vadd.f32 %v488_v59, %v487_v49  ;;  %v626_v56 = vmax.f32 %v620_v41, 1e-06 }
 0x14c   : > { %v574_v23 = vrot.slane %v573_v26, 4  ;;  %v631_v2 = vmax.f32 %v625_v5, 1e-06  ;;  %v627_v55 = vmax.f32 %v621_v7, 1e-06 }
 0x14d   : > { %v498_v37 = vadd.f32 %v497_v63, %v496_v62  ;;  %v583_v31 = vrot.slane %v582_v6, 4  ;;  %v490_v52 = vrot.slane %v489_v38, 2  ;;  %v632_v30 = vmin.f32 %v626_v56, 1000000.0 }
 0x14e   : > { %v575_v48 = vadd.f32 %v574_v23, %v573_v26  ;;  %v637_v44 = vmin.f32 %v631_v2, 1000000.0  ;;  %v633_v43 = vmin.f32 %v627_v55, 1000000.0 }
 0x14f   : > { %v499_v47 = vrot.slane %v498_v37, 2  ;;  %v584_v53 = vadd.f32 %v583_v31, %v582_v6  ;;  %v491_v60 = vadd.f32 %v490_v52, %v489_v38 }
 0x150   : > { %v576_v0 = vrot.slane %v575_v48, 2  ;;  %1063 = vlog2.f32 %v637_v44  ;;  %v650_v44 = vld [vmem:[#allocation2] sm:$0x3] }
 0x151   : > { %v500_v28 = vadd.f32 %v499_v47, %v498_v37  ;;  %v585_v54 = vrot.slane %v584_v53, 2  ;;  %v492_v27 = vrot.slane %v491_v60, 1  ;;  %1065 = vlog2.f32 %v632_v30 }
 0x152   : > { %v577_v21 = vadd.f32 %v576_v0, %v575_v48  ;;  %v1062_v57 = vpop.eup %1061  ;;  %1067 = vlog2.f32 %v633_v43  ;;  %v1502_v48 = vmov 0.0  }
 0x153   : > { %v501_v4 = vrot.slane %v500_v28, 1  ;;  %v586_v32 = vadd.f32 %v585_v54, %v584_v53  ;;  %v493_v33 = vadd.f32 %v492_v27, %v491_v60  ;;  %v643_v49 = vmul.f32 0.6931472, %v1062_v57  ;;  %v909_v27 = vld [vmem:[%s1479_s3] ss:$0 sm:$0xff] (%p43_p0)  ;;  %s1077_s3 = scalar_lea.vmem (%p43_p0), %s861_s2, 32 }
 0x154   : > { %v578_v3 = vrot.slane %v577_v21, 1  ;;  %p1078_p1 = scmp.ne.s32.totalorder (%p43_p0), %s861_s2, %s1077_s3  ;;  %p1083_p3 = scmp.lt.s32.totalorder (%p43_p0), %s1077_s3, %s1077_s3 }
 0x155   : > { %v502_v25 = vadd.f32 %v501_v4, %v500_v28  ;;  %v587_v8 = vrot.slane %v586_v32, 1  ;;  %v605_v42 = vmul.f32 %v493_v33, %v493_v33 }
 0x156   : > { %v579_v29 = vadd.f32 %v578_v3, %v577_v21  ;;  %p1084_p4 = por (%p43_p0), %p1083_p3, %p1082_p2 }
 0x157   : > { %v606_v35 = vmul.f32 %v502_v25, %v502_v25  ;;  %v611_v36 = vmul.f32 0.03125, %v605_v42  ;;  %v588_v51 = vadd.f32 %v587_v8, %v586_v32 }
 0x158   :  { %p1085_p5 = pnand (%p43_p0), %p1084_p4, %p1078_p1 }
 0x159   : > { %v612_v61 = vmul.f32 0.03125, %v606_v35  ;;  %v617_v46 = vsub.f32 %v579_v29, %v611_v36 }
 0x15a   : > { %v1064_v40 = vpop.eup %1063 }
 0x15b   : > { %v618_v1 = vsub.f32 %v588_v51, %v612_v61  ;;  %v623_v58 = vmul.f32 0.032258064, %v617_v46  ;;  %v649_v22 = vmul.f32 0.6931472, %v1064_v40  ;;  %v1066_v63 = vpop.eup %1065 }
 0x15c   : > { %v1068_v6 = vpop.eup %1067  ;;  %v639_v38 = vmul.f32 0.6931472, %v1066_v63 }
 0x15d   : > { %v624_v39 = vmul.f32 0.032258064, %v618_v1  ;;  %v629_v24 = vmax.f32 %v623_v58, 1e-06  ;;  %v664_v62 = vsel %vm661_vm3, %v649_v22, %v643_v49  ;;  %v641_v37 = vmul.f32 0.6931472, %v1068_v6 }
 0x15f   : > { %v630_v45 = vmax.f32 %v624_v39, 1e-06  ;;  %v635_v59 = vmin.f32 %v629_v24, 1000000.0 }
 0x161   : > { %v636_v26 = vmin.f32 %v630_v45, 1000000.0  ;;  %1069 = vlog2.f32 %v635_v59 }
 0x163   : > { %1071 = vlog2.f32 %v636_v26 }
 0x16b   : > { %v1070_v5 = vpop.eup %1069 }
 0x16c   : > { %v645_v23 = vmul.f32 0.6931472, %v1070_v5 }
 0x16d   : > { %v1072_v34 = vpop.eup %1071 }
 0x16e   : > { %v647_v31 = vmul.f32 0.6931472, %v1072_v34  ;;  %v662_v2 = vsel %vm661_vm3, %v645_v23, %v639_v38 }
 0x170   : > { %v663_v52 = vsel %vm661_vm3, %v647_v31, %v641_v37 }
 0x171   : > { %754 = vmatprep.mubr.f32.mxu1 %v663_v52 }
 0x172   : > { %755 = vmatmul.mubr.f32.vlgmr.msra.gmra.mrb[8].mxu1 %v662_v2 }
 0x173   : > { %942 = vmatpush3.xpose.msk.msra.mxu1 %vm471_vm2, %v1298_v50  ;;  %943 = vmatprep.mubr.msk.f32.mxu1 %vm1113_vm4, %v1502_v48 }
 0x176   : > { %944 = vmatmul.mubr.msk.f32.vlgmr.msra.gmra.mrb[10].mxu1 %vm471_vm2, %v664_v62 }
 0x245   : > { %v756_v47 = vpop.f32.mrb[8].mxu1 }
 0x246   : > { %v758_v53 = vpop.f32.mrb[9].mxu1 }
 0x248   :  { %45 = sbr.rel (!%p43_p0) target bundleno = 9 (0x9), region = 45 }
 0x249   : > { %v826_v60 = vpop.f32.mrb[10].mxu1 }
 0x24a   : > { %v827_v0 = vadd.f32 %v826_v60, %v756_v47  ;;  %v945_v28 = vpop.f32.mrb[11].mxu1 }
 0x24c   : > { %v830_v54 = vadd.f32 %v827_v0, %v650_v44 }
 0x24e   : > { %831 = vst.msk [vmem:[#allocation2] sm:$0x3] %vm39_vm0, %v830_v54 }
 0x255   :  { %v832_v50 = vld [vmem:[#allocation2] sm:$0x3] }
 0x256   :  { %v840_v21 = vadd.f32 %v909_v27, %v832_v50 }
 0x258   :  { %v841_v41 = vsel %vm39_vm0, %v840_v21, -inf }
 0x259   :  { %842 = vmax.xlane.f32.xlu0 %v841_v41 }
 0x2e6   :  { %v843_v4 = vpop.xlane.xlu0 %842 }
 0x2e7   :  { %v844_v32 = vsub.f32 %v840_v21, %v843_v4 }
 0x2e9   :  { %v845_v33 = vmul.f32 1.442695, %v844_v32 }
 0x2eb   :  { %1073 = vpow2.f32 %v845_v33 }
 0x2f5   :  { %v1074_v3 = vpop.eup %1073 }
 0x2f6   :  { %v847_v25 = vsel %vm39_vm0, %v1074_v3, 0.0 }
 0x2f7   :  { %848 = vadd.xlane.f32.xlu0 %v847_v25 }
 0x384   :  { %v849_v8 = vpop.xlane.xlu0 %848 }
 0x385   :  { %1075 = vlog2.f32 %v849_v8 }
 0x38f   :  { %v1076_v7 = vpop.eup %1075 }
 0x390   :  { %v851_v9 = vmul.f32 0.6931472, %v1076_v7 }
 0x392   :  { %v852_v10 = vsub.f32 %v844_v32, %v851_v9 }
 0x394   :  { %853 = vst.msk [vmem:[#allocation3] sm:$0x3] %vm39_vm0, %v852_v10 }
 0x395   :  { %1088 = shalt.err (!%p1085_p5)
}
 0x396   :  { %s1089_s15 = scalar_lea.hbm %s1480_s4, 32 }
 0x397   :  { %p1090_p6 = scmp.ne.s32.totalorder %s1480_s4, %s1089_s15  ;;  %p1093_p7 = scmp.lt.u32.totalorder %s1089_s15, %s1480_s4 }
 0x399   :  { %p1095_p8 = pnand %p1093_p7, %p1090_p6 }
 0x39b   :  { %1098 = shalt.err (!%p1095_p8)
}
 0x39c   :  { %863 = dma.vmem_to_hbm [thread:$0]  %s861_s2, 32, %s1480_s4, [#allocation4]  }
 0x39d   :  { %1103 = dma.done.wait [#allocation4], 32  }
 0x39e   :  { %1104 = vsyncadd [#allocation4], 4294967264 }
 0x39f   :  { %867 = vsyncpa [#allocation4], 1 }

</bundles_post_ra>
